<compile_context>
chip_gen: v7x
topology: tpu7x:2x2x1
jax: 0.10.0
libtpu: 0.0.40
codegen_flags: <defaults>
</compile_context>

<pallas_src>
import jax
import jax.numpy as jnp
from jax.experimental import pallas as pl
from jax.experimental.pallas import tpu as pltpu


# ----------------------------- kernels ---------------------------------------

def _decoder_mlp_kernel(uh_ref, vh_ref,
                        w1t_ref, b1_ref,
                        w2t_ref, b2_ref,
                        w3_ref, scal_ref,
                        out_ref):
    # Edge-feature interaction (VPU); upcast after the DMA so bf16 inputs halve
    # HBM traffic while all math stays f32 (portable to v5e).
    prod = uh_ref[...].astype(jnp.float32) * vh_ref[...].astype(jnp.float32)   # (t, D)

    # Linear 1 as an NT matmul: (H1, D) x (t, D)^T -> (H1, t).  Lane-dense.
    h = jax.lax.dot_general(w1t_ref[...], prod,
                            (((1,), (1,)), ((), ())),
                            preferred_element_type=jnp.float32)
    h = h + b1_ref[...]                                     # (H1, 1) lane-broadcast
    h = jnp.where(h >= 0.0, h, scal_ref[0] * h)             # PReLU (Dropout p=0 == id)

    # Linear 2: (H2, H1) x (H1, t) -> (H2, t).
    h = jnp.dot(w2t_ref[...], h, preferred_element_type=jnp.float32) + b2_ref[...]
    h = jnp.where(h >= 0.0, h, scal_ref[1] * h)

    # Linear 3 (H2 -> 1) on VPU + sublane reduce: output born lane-dense (1, t).
    out_ref[...] = jnp.sum(h * w3_ref[...], axis=0, keepdims=True) + scal_ref[2]


def _decoder_dot_kernel(uh_ref, vh_ref, out_ref):
    # Generic fallback: (t, D) product, per-edge sum via MXU contraction with a
    # ones row (idle MXU; avoids XLU transpose + cross-sublane reduce).
    prod = uh_ref[...].astype(jnp.float32) * vh_ref[...].astype(jnp.float32)   # (t, D)
    ones = jnp.ones((1, prod.shape[1]), jnp.float32)
    out_ref[...] = jax.lax.dot_general(ones, prod,
                                       (((1,), (1,)), ((), ())),
                                       preferred_element_type=jnp.float32)     # (1, t)


def _decoder_dot_packed_kernel(seg_ref, uh_ref, vh_ref, out_ref):
    # Lane-packed layout: each (row, 128) carries g = 128//D edges -> full vreg
    # lane occupancy for the loads and the VPU product.  Segmented per-edge sum
    # done on the MXU against the resident (g, 128) selector; lane-dense (g, t).
    prod = uh_ref[...].astype(jnp.float32) * vh_ref[...].astype(jnp.float32)   # (t, 128)
    out_ref[...] = jax.lax.dot_general(seg_ref[...], prod,
                                       (((1,), (1,)), ((), ())),
                                       preferred_element_type=jnp.float32)     # (g, t)


# ----------------------------- helpers ----------------------------------------

def _round_up(x, m):
    return (x + m - 1) // m * m


def _cdiv(a, b):
    return (a + b - 1) // b


def _pick_tile(n, tile_req):
    """Pick an edge/row tile (multiple of 128) and the grid size.

    - tiny n (round_up(n,128) < 256): one exact full-array block (no masking,
      no per-step overhead).
    - otherwise: guarantee >= 2 tiles so ("parallel",) grid sharding can use
      both v7x TensorCores; cap the tile at the requested size.
    """
    n128 = _round_up(n, 128)
    if n128 < 256:
        return n, 1
    t_cap = _round_up(n128 // 2, 128)                 # ensures at least 2 tiles
    t = min(_round_up(max(tile_req, 128), 128), t_cap)
    return t, _cdiv(n, t)


# ----------------------------- wrappers ---------------------------------------

def decoder_mat_mlp(uh, vh, params, *, tile_e=8192):
    """MLP decoder path of BaseLinkEncoderDecoder.decoder_mat (eval / dropout=0)."""
    E, D = uh.shape
    w1, b1, a1, w2, b2, a2, w3, b3 = params
    H1 = w1.shape[1]
    H2 = w2.shape[1]
    assert w3.shape[1] == 1, "link-prediction decoder_out_dim must be 1"
    # nn.PReLU() default has a single slope; per-channel slopes are not supported here.
    assert a1.size == 1 and a2.size == 1, "PReLU must use num_parameters=1"

    # One-off tiny layout plumbing (weights -> feature-major orientation, f32).
    w1t = w1.T.astype(jnp.float32)                   # (H1, D)
    w2t = w2.T.astype(jnp.float32)                   # (H2, H1)
    b1c = b1.reshape(H1, 1).astype(jnp.float32)      # (H1, 1)
    b2c = b2.reshape(H2, 1).astype(jnp.float32)      # (H2, 1)
    w3c = w3.reshape(H2, 1).astype(jnp.float32)      # (H2, 1)
    scalars = jnp.concatenate(
        [a1.reshape(1), a2.reshape(1), b3.reshape(1)]).astype(jnp.float32)  # SMEM

    t, n_tiles = _pick_tile(E, tile_e)

    in_bytes = 2 * E * D * uh.dtype.itemsize
    flops = 2 * E * (D * H1 + H1 * H2 + H2) + E * D
    bytes_accessed = in_bytes + 4 * (E + D * H1 + H1 * H2 + 2 * H2 + H1 + 3)

    out = pl.pallas_call(
        _decoder_mlp_kernel,
        out_shape=jax.ShapeDtypeStruct((1, E), jnp.float32),
        grid_spec=pltpu.PrefetchScalarGridSpec(
            num_scalar_prefetch=0,
            grid=(n_tiles,),
            in_specs=[
                pl.BlockSpec((t, D), lambda i: (i, 0)),          # uh tile (no pad copy)
                pl.BlockSpec((t, D), lambda i: (i, 0)),          # vh tile
                pl.BlockSpec((H1, D), lambda i: (0, 0)),         # W1^T (resident)
                pl.BlockSpec((H1, 1), lambda i: (0, 0)),         # b1
                pl.BlockSpec((H2, H1), lambda i: (0, 0)),        # W2^T
                pl.BlockSpec((H2, 1), lambda i: (0, 0)),         # b2
                pl.BlockSpec((H2, 1), lambda i: (0, 0)),         # w3 column
                pl.BlockSpec(memory_space=pltpu.MemorySpace.SMEM),  # [a1, a2, b3]
            ],
            out_specs=pl.BlockSpec((1, t), lambda i: (0, i)),    # lane-dense scores
        ),
        compiler_params=pltpu.CompilerParams(
            dimension_semantics=("parallel",)),
        cost_estimate=pl.CostEstimate(
            flops=flops, transcendentals=0, bytes_accessed=bytes_accessed),
    )(uh, vh, w1t, b1c, w2t, b2c, w3c, scalars)

    return out.reshape(E)  # score = h.squeeze(-1)


def decoder_mat_dot(uh, vh, *, tile_e=8192):
    """Dot-product decoder path: score = (uh * vh).sum(-1)."""
    E, D = uh.shape
    itemsize = uh.dtype.itemsize
    ce = pl.CostEstimate(flops=2 * E * D, transcendentals=0,
                         bytes_accessed=2 * E * D * itemsize + 4 * E)

    g = 128 // D if (0 < D <= 128 and 128 % D == 0) else 0
    if g > 1 and E % g == 0:
        # Lane-packed path: view (E, D) as (E//g, 128) -- free contiguous reshape.
        R = E // g
        uh_p = uh.reshape(R, 128)
        vh_p = vh.reshape(R, 128)
        seg = (jnp.arange(128)[None, :] // D
               == jnp.arange(g)[:, None]).astype(jnp.float32)      # (g, 128)
        tr, n_tiles = _pick_tile(R, max(tile_e // g, 128))

        out = pl.pallas_call(
            _decoder_dot_packed_kernel,
            out_shape=jax.ShapeDtypeStruct((g, R), jnp.float32),
            grid_spec=pltpu.PrefetchScalarGridSpec(
                num_scalar_prefetch=0,
                grid=(n_tiles,),
                in_specs=[
                    pl.BlockSpec((g, 128), lambda i: (0, 0)),       # segment selector (resident)
                    pl.BlockSpec((tr, 128), lambda i: (i, 0)),
                    pl.BlockSpec((tr, 128), lambda i: (i, 0)),
                ],
                out_specs=pl.BlockSpec((g, tr), lambda i: (0, i)),  # lane-dense
            ),
            compiler_params=pltpu.CompilerParams(
                dimension_semantics=("parallel",)),
            cost_estimate=ce,
        )(seg, uh_p, vh_p)
        # out[j, i] = score(g*i + j); tiny (4*E byte) layout plumbing on output only.
        return out.T.reshape(E)

    # Generic fallback (D doesn't pack into 128 lanes or E not a multiple of g).
    t, n_tiles = _pick_tile(E, tile_e)
    out = pl.pallas_call(
        _decoder_dot_kernel,
        out_shape=jax.ShapeDtypeStruct((1, E), jnp.float32),
        grid_spec=pltpu.PrefetchScalarGridSpec(
            num_scalar_prefetch=0,
            grid=(n_tiles,),
            in_specs=[
                pl.BlockSpec((t, D), lambda i: (i, 0)),
                pl.BlockSpec((t, D), lambda i: (i, 0)),
            ],
            out_specs=pl.BlockSpec((1, t), lambda i: (0, i)),
        ),
        compiler_params=pltpu.CompilerParams(
            dimension_semantics=("parallel",)),
        cost_estimate=ce,
    )(uh, vh)
    return out.reshape(E)


# ----------------------------- reference (plain JAX) --------------------------

def _prelu(x, a):
    return jnp.where(x >= 0, x, a * x)


def _ref_mlp(uh, vh, params):
    w1, b1, a1, w2, b2, a2, w3, b3 = params
    h = uh * vh
    h = _prelu(h @ w1 + b1, a1[0, 0])
    h = _prelu(h @ w2 + b2, a2[0, 0])
    return (h * w3[:, 0]).sum(-1) + b3[0, 0]


def _ref_dot(uh, vh):
    return (uh * vh).sum(-1)


# ----------------------------- main -------------------------------------------

if __name__ == "__main__":
    # encoder hidden dim D = 32, decoder_hidden_dims = [32, 32], out_dim = 1.
    D, H1, H2, O = 32, 32, 32, 1

    key = jax.random.PRNGKey(0)
    keys = jax.random.split(key, 8)

    # Deterministic parameter init (PyTorch Linear-style uniform bounds);
    # PReLU weight = 0.25 as in nn.PReLU default.
    def lin_init(kw, kb, din, dout):
        bound = 1.0 / (din ** 0.5)
        w = jax.random.uniform(kw, (din, dout), jnp.float32, -bound, bound)
        b = jax.random.uniform(kb, (1, dout), jnp.float32, -bound, bound)
        return w, b

    w1, b1 = lin_init(keys[0], keys[1], D, H1)
    w2, b2 = lin_init(keys[2], keys[3], H1, H2)
    w3, b3 = lin_init(keys[4], keys[5], H2, O)
    a1 = jnp.full((1, 1), 0.25, dtype=jnp.float32)
    a2 = jnp.full((1, 1), 0.25, dtype=jnp.float32)
    params = (w1, b1, a1, w2, b2, a2, w3, b3)

    # TODO(synk): encoder / DGL graph message passing (blocks, apply_edges) and
    # the DistMult decoder_config path have no standalone computation in this
    # base class and are not translated.

    # case 1: tiny E     -> single exact full-array block (no grid overhead)
    # case 2: ragged E   -> multi-tile grid, masked last tile, packed dot path
    # case 3: E % 4 != 0 -> ragged grid + generic (non-packed) dot fallback
    # case 4: bf16 input -> halved HBM traffic, >=2 tiles for v7x megacore
    cases = [
        (128,  None, jnp.float32),
        (2000, 512,  jnp.float32),
        (1001, None, jnp.float32),
        (4096, None, jnp.bfloat16),
    ]
    for E, tile_e, dt in cases:
        ku, kv = jax.random.split(jax.random.fold_in(keys[6], E))
        uh = jax.random.normal(ku, (E, D), dtype=jnp.float32)
        vh = jax.random.normal(kv, (E, D), dtype=jnp.float32)
        uh_in = uh.astype(dt)
        vh_in = vh.astype(dt)
        # Reference on the exact (possibly bf16-rounded) values the kernel sees.
        uh_f = uh_in.astype(jnp.float32)
        vh_f = vh_in.astype(jnp.float32)

        kwargs = {} if tile_e is None else {"tile_e": tile_e}
        score_mlp = jax.block_until_ready(decoder_mat_mlp(uh_in, vh_in, params, **kwargs))
        score_dot = jax.block_until_ready(decoder_mat_dot(uh_in, vh_in, **kwargs))

        ref_mlp = _ref_mlp(uh_f, vh_f, params)
        ref_dot = _ref_dot(uh_f, vh_f)

        assert score_mlp.shape == (E,)
        assert score_dot.shape == (E,)
        assert jnp.allclose(score_mlp, ref_mlp, rtol=1e-5, atol=1e-5), \
            float(jnp.max(jnp.abs(score_mlp - ref_mlp)))
        assert jnp.allclose(score_dot, ref_dot, rtol=1e-5, atol=1e-5), \
            float(jnp.max(jnp.abs(score_dot - ref_dot)))

    print("KERNEL_OK")
</pallas_src>

<mosaic_0001>
module attributes {stable_mosaic.version = 11 : i64} {
  func.func @_decoder_mlp_kernel(%arg0: i32, %arg1: memref<128x32xf32, #tpu.memory_space<vmem>>, %arg2: memref<128x32xf32, #tpu.memory_space<vmem>>, %arg3: memref<32x32xf32, #tpu.memory_space<vmem>>, %arg4: memref<32x1xf32, #tpu.memory_space<vmem>>, %arg5: memref<32x32xf32, #tpu.memory_space<vmem>>, %arg6: memref<32x1xf32, #tpu.memory_space<vmem>>, %arg7: memref<32x1xf32, #tpu.memory_space<vmem>>, %arg8: memref<3xf32, #tpu.memory_space<smem>>, %arg9: memref<1x128xf32, #tpu.memory_space<vmem>>) attributes {dimension_semantics = [#tpu.dimension_semantics<parallel>], iteration_bounds = array<i64: 1>, scalar_prefetch = 0 : i64, scratch_operands = 0 : i64, tpu.core_type = #tpu.core_type<tc>, window_params = [{transform_indices = @transform_0, window_bounds = array<i64: 128, 32>}, {transform_indices = @transform_1, window_bounds = array<i64: 128, 32>}, {pipeline_mode = #tpu.pipeline_mode<synchronous>, transform_indices = @transform_2, window_bounds = array<i64: 32, 32>}, {pipeline_mode = #tpu.pipeline_mode<synchronous>, transform_indices = @transform_3, window_bounds = array<i64: 32, 1>}, {pipeline_mode = #tpu.pipeline_mode<synchronous>, transform_indices = @transform_4, window_bounds = array<i64: 32, 32>}, {pipeline_mode = #tpu.pipeline_mode<synchronous>, transform_indices = @transform_5, window_bounds = array<i64: 32, 1>}, {pipeline_mode = #tpu.pipeline_mode<synchronous>, transform_indices = @transform_6, window_bounds = array<i64: 32, 1>}, {transform_indices = @transform_7, window_bounds = array<i64: 3>}, {transform_indices = @transform_8, window_bounds = array<i64: 1, 128>}]} {
    %c0 = arith.constant 0 : index
    %c0_0 = arith.constant 0 : index
    %0 = vector.load %arg1[%c0, %c0_0] : memref<128x32xf32, #tpu.memory_space<vmem>>, vector<128x32xf32>
    %c0_1 = arith.constant 0 : index
    %c0_2 = arith.constant 0 : index
    %1 = vector.load %arg2[%c0_1, %c0_2] : memref<128x32xf32, #tpu.memory_space<vmem>>, vector<128x32xf32>
    %2 = arith.mulf %0, %1 : vector<128x32xf32>
    %c0_3 = arith.constant 0 : index
    %c0_4 = arith.constant 0 : index
    %3 = vector.load %arg3[%c0_3, %c0_4] : memref<32x32xf32, #tpu.memory_space<vmem>>, vector<32x32xf32>
    %cst = arith.constant dense<0.000000e+00> : vector<32x128xf32>
    %4 = tpu.matmul %3, %2, %cst {dimension_numbers = #tpu.dot_dimension_numbers<[1], [1], [0], [0], [0, 0, 1, 0], [], []>} : vector<32x32xf32>, vector<128x32xf32>, vector<32x128xf32> -> vector<32x128xf32>
    %c0_5 = arith.constant 0 : index
    %c0_6 = arith.constant 0 : index
    %5 = vector.load %arg4[%c0_5, %c0_6] : memref<32x1xf32, #tpu.memory_space<vmem>>, vector<32x1xf32>
    %6 = vector.broadcast %5 : vector<32x1xf32> to vector<32x128xf32>
    %7 = arith.addf %4, %6 : vector<32x128xf32>
    %cst_7 = arith.constant 0.000000e+00 : f32
    %8 = vector.broadcast %cst_7 : f32 to vector<32x128xf32>
    %9 = arith.cmpf oge, %7, %8 : vector<32x128xf32>
    %c0_8 = arith.constant 0 : index
    %10 = memref.load %arg8[%c0_8] : memref<3xf32, #tpu.memory_space<smem>>
    %11 = vector.broadcast %10 : f32 to vector<32x128xf32>
    %12 = arith.mulf %11, %7 : vector<32x128xf32>
    %13 = arith.select %9, %7, %12 : vector<32x128xi1>, vector<32x128xf32>
    %c0_9 = arith.constant 0 : index
    %c0_10 = arith.constant 0 : index
    %14 = vector.load %arg5[%c0_9, %c0_10] : memref<32x32xf32, #tpu.memory_space<vmem>>, vector<32x32xf32>
    %cst_11 = arith.constant dense<0.000000e+00> : vector<32x128xf32>
    %15 = tpu.matmul %14, %13, %cst_11 {dimension_numbers = #tpu.dot_dimension_numbers<[1], [0], [0], [1], [0, 0, 1, 1], [], []>} : vector<32x32xf32>, vector<32x128xf32>, vector<32x128xf32> -> vector<32x128xf32>
    %c0_12 = arith.constant 0 : index
    %c0_13 = arith.constant 0 : index
    %16 = vector.load %arg6[%c0_12, %c0_13] : memref<32x1xf32, #tpu.memory_space<vmem>>, vector<32x1xf32>
    %17 = vector.broadcast %16 : vector<32x1xf32> to vector<32x128xf32>
    %18 = arith.addf %15, %17 : vector<32x128xf32>
    %cst_14 = arith.constant 0.000000e+00 : f32
    %19 = vector.broadcast %cst_14 : f32 to vector<32x128xf32>
    %20 = arith.cmpf oge, %18, %19 : vector<32x128xf32>
    %c1 = arith.constant 1 : index
    %21 = memref.load %arg8[%c1] : memref<3xf32, #tpu.memory_space<smem>>
    %22 = vector.broadcast %21 : f32 to vector<32x128xf32>
    %23 = arith.mulf %22, %18 : vector<32x128xf32>
    %24 = arith.select %20, %18, %23 : vector<32x128xi1>, vector<32x128xf32>
    %c0_15 = arith.constant 0 : index
    %c0_16 = arith.constant 0 : index
    %25 = vector.load %arg7[%c0_15, %c0_16] : memref<32x1xf32, #tpu.memory_space<vmem>>, vector<32x1xf32>
    %26 = vector.broadcast %25 : vector<32x1xf32> to vector<32x128xf32>
    %27 = arith.mulf %24, %26 : vector<32x128xf32>
    %cst_17 = arith.constant dense<0.000000e+00> : vector<128xf32>
    %28 = vector.multi_reduction <add>, %27, %cst_17 [0] : vector<32x128xf32> to vector<128xf32>
    %29 = vector.shape_cast %28 : vector<128xf32> to vector<1x128xf32>
    %c2 = arith.constant 2 : index
    %30 = memref.load %arg8[%c2] : memref<3xf32, #tpu.memory_space<smem>>
    %31 = vector.broadcast %30 : f32 to vector<1x128xf32>
    %32 = arith.addf %29, %31 : vector<1x128xf32>
    %c0_18 = arith.constant 0 : index
    %c0_19 = arith.constant 0 : index
    %33 = vector.load %arg9[%c0_18, %c0_19] : memref<1x128xf32, #tpu.memory_space<vmem>>, vector<1x128xf32>
    tpu.vector_store %arg9[%c0_18, %c0_19], %32 {strides = array<i32>} : memref<1x128xf32, #tpu.memory_space<vmem>>, vector<1x128xf32>,
    return
  }
  func.func @transform_0(%arg0: i32) -> (i32, i32) {
    %c0_i32 = arith.constant 0 : i32
    %c0_i32_0 = arith.constant 0 : i32
    return %arg0, %c0_i32 : i32, i32
  }
  func.func @transform_1(%arg0: i32) -> (i32, i32) {
    %c0_i32 = arith.constant 0 : i32
    %c0_i32_0 = arith.constant 0 : i32
    return %arg0, %c0_i32 : i32, i32
  }
  func.func @transform_2(%arg0: i32) -> (i32, i32) {
    %c0_i32 = arith.constant 0 : i32
    %c0_i32_0 = arith.constant 0 : i32
    %c0_i32_1 = arith.constant 0 : i32
    return %c0_i32, %c0_i32_0 : i32, i32
  }
  func.func @transform_3(%arg0: i32) -> (i32, i32) {
    %c0_i32 = arith.constant 0 : i32
    %c0_i32_0 = arith.constant 0 : i32
    %c0_i32_1 = arith.constant 0 : i32
    return %c0_i32, %c0_i32_0 : i32, i32
  }
  func.func @transform_4(%arg0: i32) -> (i32, i32) {
    %c0_i32 = arith.constant 0 : i32
    %c0_i32_0 = arith.constant 0 : i32
    %c0_i32_1 = arith.constant 0 : i32
    return %c0_i32, %c0_i32_0 : i32, i32
  }
  func.func @transform_5(%arg0: i32) -> (i32, i32) {
    %c0_i32 = arith.constant 0 : i32
    %c0_i32_0 = arith.constant 0 : i32
    %c0_i32_1 = arith.constant 0 : i32
    return %c0_i32, %c0_i32_0 : i32, i32
  }
  func.func @transform_6(%arg0: i32) -> (i32, i32) {
    %c0_i32 = arith.constant 0 : i32
    %c0_i32_0 = arith.constant 0 : i32
    %c0_i32_1 = arith.constant 0 : i32
    return %c0_i32, %c0_i32_0 : i32, i32
  }
  func.func @transform_7(%arg0: i32) -> i32 {
    %c0_i32 = arith.constant 0 : i32
    %c0_i32_0 = arith.constant 0 : i32
    return %c0_i32 : i32
  }
  func.func @transform_8(%arg0: i32) -> (i32, i32) {
    %c0_i32 = arith.constant 0 : i32
    %c0_i32_0 = arith.constant 0 : i32
    return %c0_i32, %arg0 : i32, i32
  }
}

</mosaic_0001>

<bundles_post_ra>
// kernel: tpu_custom_call.1
= control target key start
LH: loop header
LB: loop body
LE: loop exit
PB: predicated region body
PF: predicated region fallthrough
CT: control target
= control target key end

     0   :  { %13 = vsyncpa [#allocation4], 0  ;;  %s944_s0 = inlined_call_operand.vmem [shape: f32[128,32], index: 0, kind: input, shape index: {}]   ;;  %s945_s1 = inlined_call_operand.vmem [shape: f32[128,32], index: 1, kind: input, shape index: {}]   ;;  %s946_s2 = inlined_call_operand.vmem [shape: f32[32,32], index: 2, kind: input, shape index: {}]   ;;  %s947_s3 = inlined_call_operand.vmem [shape: f32[32,1], index: 3, kind: input, shape index: {}]   ;;  %s948_s4 = inlined_call_operand.vmem [shape: f32[32,32], index: 4, kind: input, shape index: {}]   ;;  %s949_s5 = inlined_call_operand.vmem [shape: f32[32,1], index: 5, kind: input, shape index: {}]   ;;  %s950_s6 = inlined_call_operand.vmem [shape: f32[32,1], index: 6, kind: input, shape index: {}]   ;;  %s951_s7 = inlined_call_operand.vmem [shape: f32[3], index: 7, kind: input, shape index: {}]   ;;  %s952_s8 = inlined_call_operand.hbm [shape: f32[1,128], index: 8, kind: output, shape index: {}]  }
   0x1   :  { %14 = vsyncpa [#allocation3], 0  ;;  %s35_s29 = sshll.u32 %s951_s7, 4  ;;  %s36_s29 = int_to_ptr.vmem [resolvable:$true] %s35_s29 }
   0x2   :  { %s641_s30 = scalar_lea.vmem %s36_s29, 16  ;;  %p646_p1 = scmp.lt.s32.totalorder %s36_s29, %s36_s29 }
   0x3   :  { %p642_p0 = scmp.ne.s32.totalorder %s36_s29, %s641_s30  ;;  %p647_p2 = scmp.lt.s32.totalorder %s641_s30, %s641_s30 }
   0x5   :  { %p648_p3 = por %p647_p2, %p646_p1 }
   0x7   :  { %p649_p4 = pnand %p648_p3, %p642_p0 }
   0x9   :  { %652 = shalt.err (!%p649_p4)
}
   0xa   :  { %s679_s9 = smov [#allocation2]  }
   0xb   :  { %38 = dma.vmem_to_smem %s36_s29, 16, %s679_s9, [#allocation4]  }
   0xc   :  { %675 = dma.done.wait [#allocation4], 16  }
   0xd   :  { %676 = vsyncadd [#allocation4], 4294967280 }
   0xe   :  { %42 = sfence }
   0xf   :  { %v43_v0 = vld [vmem:[%s944_s0] sm:$0xff]  ;;  %v44_v1 = vld [vmem:[%s944_s0 + $0x8] sm:$0xff]  ;;  %vm119_vm0 = vcmask 261120   ;;  %v45_v5 = vld [vmem:[%s944_s0 + $0x10] sm:$0xff]  ;;  %v680_v6 = vmov 0   ;;  %s269_s9 = sld [smem:[#allocation2]] }
  0x10   :  { %v59_v2 = vld [vmem:[%s945_s1] sm:$0xff]  ;;  %v60_v3 = vld [vmem:[%s945_s1 + $0x8] sm:$0xff]  ;;  %639 = vset.pattern.permute.xlu0 %v680_v6  ;;  %640 = vset.pattern.permute.xlu1 %v680_v6  ;;  %v46_v8 = vld [vmem:[%s944_s0 + $0x18] sm:$0xff]  ;;  %s498_s7 = sld [smem:[#allocation2 + $0x1]]  ;;  %s681_s14 = smov [#allocation5]  }
  0x11   :  { %v75_v4 = vmul.f32 %v59_v2, %v43_v0  ;;  %v76_v7 = vmul.f32 %v60_v3, %v44_v1  ;;  %v61_v9 = vld [vmem:[%s945_s1 + $0x10] sm:$0xff]  ;;  %v62_v10 = vld [vmem:[%s945_s1 + $0x18] sm:$0xff]  ;;  %vm756_vm1 = vmpackc.low %vm119_vm0, %vm119_vm0 }
  0x12   :  { %v77_v12 = vmul.f32 %v61_v9, %v45_v5  ;;  %v78_v13 = vmul.f32 %v62_v10, %v46_v8  ;;  %v47_v15 = vld [vmem:[%s944_s0 + $0x20] sm:$0xff]  ;;  %v48_v17 = vld [vmem:[%s944_s0 + $0x28] sm:$0xff]  ;;  %v49_v24 = vld [vmem:[%s944_s0 + $0x30] sm:$0xff] }
  0x13   :  { %v580_v14 = vpack.c.bf16 %v76_v7, %v75_v4  ;;  %v63_v18 = vld [vmem:[%s945_s1 + $0x20] sm:$0xff]  ;;  %v64_v19 = vld [vmem:[%s945_s1 + $0x28] sm:$0xff]  ;;  %v97_v26 = vld [vmem:[%s947_s3 + $0x10] sm:$0xff] }
  0x14   :  { %v586_v16 = vpack.c.bf16 %v78_v13, %v77_v12  ;;  %v79_v20 = vmul.f32 %v63_v18, %v47_v15  ;;  %v80_v21 = vmul.f32 %v64_v19, %v48_v17  ;;  %v91_v22 = vld [vmem:[%s946_s2] sm:$0xff]  ;;  %v50_v27 = vld [vmem:[%s944_s0 + $0x38] sm:$0xff]  ;;  %v65_v28 = vld [vmem:[%s945_s1 + $0x30] sm:$0xff]  ;;  %111 = vperm.xlu1 %640, %v97_v26  }
  0x15   :  { %582 = vmatprep.subr.msk.bf16.mxu0 %vm756_vm1, %v580_v14  ;;  %560 = vmatprep.mubr.msk.f32.mxu0 %vm119_vm0, %v91_v22  ;;  %v95_v25 = vld [vmem:[%s947_s3] sm:$0xff]  ;;  %v66_v29 = vld [vmem:[%s945_s1 + $0x38] sm:$0xff]  ;;  %v96_v30 = vld [vmem:[%s947_s3 + $0x8] sm:$0xff]  ;;  %v81_v32 = vmul.f32 %v65_v28, %v49_v24  ;;  %v270_v15 = vstv %s269_s9 }
  0x16   :  { %585 = vmatpush3.bf16.xpose.msk.msra.mxu0 %vm756_vm1, %v580_v14  ;;  %v592_v23 = vpack.c.bf16 %v80_v21, %v79_v20  ;;  %101 = vperm.xlu0 %639, %v95_v25   ;;  %v98_v31 = vld [vmem:[%s947_s3 + $0x18] sm:$0xff]  ;;  %v82_v33 = vmul.f32 %v66_v29, %v50_v27  ;;  %v283_v34 = vld [vmem:[%s949_s5] sm:$0xff]  ;;  %v284_v35 = vld [vmem:[%s949_s5 + $0x8] sm:$0xff] }
  0x17   :  { %588 = vmatprep.subr.msk.bf16.mxu0 %vm756_vm1, %v586_v16  ;;  %v51_v37 = vld [vmem:[%s944_s0 + $0x40] sm:$0xff]  ;;  %v52_v38 = vld [vmem:[%s944_s0 + $0x48] sm:$0xff]  ;;  %v285_v41 = vld [vmem:[%s949_s5 + $0x10] sm:$0xff] }
  0x18   :  { %116 = vperm.xlu1 %640, %v98_v31   ;;  %v598_v36 = vpack.c.bf16 %v82_v33, %v81_v32  ;;  %v67_v39 = vld [vmem:[%s945_s1 + $0x40] sm:$0xff]  ;;  %v68_v40 = vld [vmem:[%s945_s1 + $0x48] sm:$0xff]  ;;  %v286_v42 = vld [vmem:[%s949_s5 + $0x18] sm:$0xff] }
  0x19   :  { %v83_v43 = vmul.f32 %v67_v39, %v51_v37  ;;  %v84_v44 = vmul.f32 %v68_v40, %v52_v38  ;;  %v418_v45 = vld [vmem:[%s950_s6] sm:$0xff]  ;;  %v419_v46 = vld [vmem:[%s950_s6 + $0x8] sm:$0xff]  ;;  %v53_v48 = vld [vmem:[%s944_s0 + $0x50] sm:$0xff] }
  0x1a   :  { %106 = vperm.xlu0 %639, %v96_v30   ;;  %v54_v49 = vld [vmem:[%s944_s0 + $0x58] sm:$0xff]  ;;  %v69_v50 = vld [vmem:[%s945_s1 + $0x50] sm:$0xff]  ;;  %v55_v57 = vld [vmem:[%s944_s0 + $0x60] sm:$0xff] }
  0x1b   :  { %v604_v47 = vpack.c.bf16 %v84_v44, %v83_v43  ;;  %v70_v51 = vld [vmem:[%s945_s1 + $0x58] sm:$0xff]  ;;  %v420_v52 = vld [vmem:[%s950_s6 + $0x10] sm:$0xff]  ;;  %v85_v54 = vmul.f32 %v69_v50, %v53_v48  ;;  %v56_v58 = vld [vmem:[%s944_s0 + $0x68] sm:$0xff] }
  0x1c   :  { %294 = vperm.xlu1 %640, %v284_v35   ;;  %v421_v53 = vld [vmem:[%s950_s6 + $0x18] sm:$0xff]  ;;  %v86_v55 = vmul.f32 %v70_v51, %v54_v49  ;;  %v71_v59 = vld [vmem:[%s945_s1 + $0x60] sm:$0xff]  ;;  %v72_v60 = vld [vmem:[%s945_s1 + $0x68] sm:$0xff]  ;;  %s465_s6 = sshll.u32 %s681_s14, 4  ;;  %s466_s6 = int_to_ptr.vmem [resolvable:$true] %s465_s6 }
  0x1d   :  { %v87_v61 = vmul.f32 %v71_v59, %v55_v57  ;;  %v88_v62 = vmul.f32 %v72_v60, %v56_v58  ;;  %v57_v0 = vld [vmem:[%s944_s0 + $0x70] sm:$0xff]  ;;  %v58_v1 = vld [vmem:[%s944_s0 + $0x78] sm:$0xff]  ;;  %v92_v7 = vld [vmem:[%s946_s2 + $0x8] sm:$0xff]  ;;  %s653_s15 = scalar_lea.vmem %s466_s6, 16  ;;  %s657_s16 = scalar_lea.vmem %s466_s6, 32 }
  0x1e   :  { %591 = vmatpush3.bf16.xpose.msk.msra.mxu0 %vm756_vm1, %v586_v16  ;;  %289 = vperm.xlu0 %639, %v283_v34   ;;  %v610_v56 = vpack.c.bf16 %v86_v55, %v85_v54  ;;  %v73_v2 = vld [vmem:[%s945_s1 + $0x70] sm:$0xff]  ;;  %v74_v3 = vld [vmem:[%s945_s1 + $0x78] sm:$0xff]  ;;  %v279_v10 = vld [vmem:[%s948_s4] sm:$0xff]  ;;  %p654_p5 = scmp.ne.s32.totalorder %s466_s6, %s653_s15  ;;  %p658_p6 = scmp.lt.s32.totalorder %s466_s6, %s466_s6 }
  0x1f   :  { %594 = vmatprep.subr.msk.bf16.mxu0 %vm756_vm1, %v592_v23  ;;  %v616_v63 = vpack.c.bf16 %v88_v62, %v87_v61  ;;  %v89_v4 = vmul.f32 %v73_v2, %v57_v0  ;;  %v90_v5 = vmul.f32 %v74_v3, %v58_v1  ;;  %v93_v8 = vld [vmem:[%s946_s2 + $0x10] sm:$0xff]  ;;  %v94_v9 = vld [vmem:[%s946_s2 + $0x18] sm:$0xff]  ;;  %574 = vmatprep.mubr.msk.f32.mxu1 %vm119_vm0, %v279_v10  ;;  %v280_v34 = vld [vmem:[%s948_s4 + $0x8] sm:$0xff]  ;;  %p659_p7 = scmp.lt.s32.totalorder %s657_s16, %s653_s15 }
  0x20   :  { %304 = vperm.xlu1 %640, %v286_v42   ;;  %v281_v35 = vld [vmem:[%s948_s4 + $0x10] sm:$0xff]  ;;  %v409_v42 = vstv %s498_s7 }
  0x21   :  { %v622_v6 = vpack.c.bf16 %v90_v5, %v89_v4  ;;  %p660_p8 = por %p659_p7, %p658_p6 }
  0x22   :  { %299 = vperm.xlu0 %639, %v285_v41  }
  0x23   :  { %p661_p9 = pnand %p660_p8, %p654_p5 }
  0x24   :  { %429 = vperm.xlu1 %640, %v419_v46  }
  0x26   :  { %597 = vmatpush3.bf16.xpose.msk.msra.mxu0 %vm756_vm1, %v592_v23  ;;  %424 = vperm.xlu0 %639, %v418_v45  }
  0x27   :  { %600 = vmatprep.subr.msk.bf16.mxu0 %vm756_vm1, %v598_v36 }
  0x28   :  { %439 = vperm.xlu1 %640, %v421_v53  }
  0x2a   :  { %434 = vperm.xlu0 %639, %v420_v52  }
  0x2e   :  { %603 = vmatpush3.bf16.xpose.msk.msra.mxu0 %vm756_vm1, %v598_v36  ;;  %v282_v36 = vld [vmem:[%s948_s4 + $0x18] sm:$0xff]  ;;  %s499_s4 = sld [smem:[#allocation2 + $0x2]] }
  0x2f   :  { %606 = vmatprep.subr.msk.bf16.mxu0 %vm756_vm1, %v604_v47 }
  0x34   :  { %v456_v10 = vstv %s499_s4 }
  0x36   :  { %609 = vmatpush3.bf16.xpose.msk.msra.mxu0 %vm756_vm1, %v604_v47 }
  0x37   :  { %612 = vmatprep.subr.msk.bf16.mxu0 %vm756_vm1, %v610_v56 }
  0x3e   :  { %615 = vmatpush3.bf16.xpose.msk.msra.mxu0 %vm756_vm1, %v610_v56 }
  0x3f   :  { %618 = vmatprep.subr.msk.bf16.mxu0 %vm756_vm1, %v616_v63 }
  0x46   :  { %621 = vmatpush3.bf16.xpose.msk.msra.mxu0 %vm756_vm1, %v616_v63 }
  0x47   :  { %624 = vmatprep.subr.msk.bf16.mxu0 %vm756_vm1, %v622_v6 }
  0x4e   :  { %627 = vmatpush3.bf16.xpose.msk.msra.mxu0 %vm756_vm1, %v622_v6 }
  0x55   :  { %561 = vmatmul.mubr.msk.f32.vlgmr.msra.gmra.mrb[0].mxu0 %vm119_vm0, %v92_v7 }
  0x56   :  { %563 = vmatprep.mubr.msk.f32.mxu0 %vm119_vm0, %v93_v8 }
  0x59   :  { %564 = vmatmul.mubr.msk.f32.gmra.mrb[2].mxu0 %vm119_vm0, %v94_v9 }
  0x93   :  { %v112_v12 = vpop.permute.xlu1 %111 }
  0x95   :  { %v102_v11 = vpop.permute.xlu0 %101 }
  0x97   :  { %v117_v20 = vpop.permute.xlu1 %116 }
  0x99   :  { %v107_v13 = vpop.permute.xlu0 %106 }
  0x9b   :  { %v295_v38 = vpop.permute.xlu1 %294 }
  0x9d   :  { %v290_v37 = vpop.permute.xlu0 %289 }
  0x9f   :  { %v305_v40 = vpop.permute.xlu1 %304 }
  0xa1   :  { %v300_v39 = vpop.permute.xlu0 %299 }
  0xa3   :  { %v430_v50 = vpop.permute.xlu1 %429 }
  0xa5   :  { %v425_v47 = vpop.permute.xlu0 %424 }
  0xa7   :  { %v440_v1 = vpop.permute.xlu1 %439 }
  0xa9   :  { %v435_v61 = vpop.permute.xlu0 %434 }
 0x128   :  { %v562_v14 = vpop.f32.mrb[0].mxu0 }
 0x129   :  { %v252_v16 = vadd.f32 %v562_v14, %v107_v13  ;;  %v246_v17 = vpop.f32.mrb[1].mxu0 }
 0x12a   :  { %v247_v18 = vadd.f32 %v246_v17, %v102_v11 }
 0x12b   :  { %v272_v19 = vmul.f32 %v270_v15, %v252_v16  ;;  %vm266_vm2 = vcmp.ge.f32.partialorder %v252_v16, 0.0 }
 0x12c   :  { %v271_v21 = vmul.f32 %v270_v15, %v247_v18  ;;  %v565_v22 = vpop.f32.mrb[2].mxu0  ;;  %vm265_vm3 = vcmp.ge.f32.partialorder %v247_v18, 0.0 }
 0x12d   :  { %v262_v23 = vadd.f32 %v565_v22, %v117_v20  ;;  %v256_v24 = vpop.f32.mrb[3].mxu0  ;;  %v276_v25 = vsel %vm266_vm2, %v252_v16, %v272_v19 }
 0x12e   :  { %v257_v26 = vadd.f32 %v256_v24, %v112_v12  ;;  %v275_v27 = vsel %vm265_vm3, %v247_v18, %v271_v21 }
 0x12f   :  { %vm268_vm4 = vcmp.ge.f32.partialorder %v262_v23, 0.0  ;;  %v274_v28 = vmul.f32 %v270_v15, %v262_v23  ;;  %v628_v29 = vpack.c.bf16 %v276_v25, %v275_v27 }
 0x130   :  { %vm267_vm5 = vcmp.ge.f32.partialorder %v257_v26, 0.0  ;;  %v273_v30 = vmul.f32 %v270_v15, %v257_v26 }
 0x131   :  { %629 = vmatprep.subr.bf16.mxu1 %v628_v29  ;;  %v278_v31 = vsel %vm268_vm4, %v262_v23, %v274_v28 }
 0x132   :  { %631 = vmatpush3.bf16.msra.mxu1 %v628_v29  ;;  %v277_v32 = vsel %vm267_vm5, %v257_v26, %v273_v30 }
 0x133   :  { %v632_v33 = vpack.c.bf16 %v278_v31, %v277_v32 }
 0x135   :  { %633 = vmatprep.subr.bf16.mxu1 %v632_v33 }
 0x136   :  { %635 = vmatpush3.bf16.msra.mxu1 %v632_v33 }
 0x139   :  { %575 = vmatmul.mubr.msk.f32.vlgmr.msra.gmra.mrb[0].mxu1 %vm119_vm0, %v280_v34 }
 0x13a   :  { %577 = vmatprep.mubr.msk.f32.mxu1 %vm119_vm0, %v281_v35 }
 0x13d   :  { %578 = vmatmul.mubr.msk.f32.gmra.mrb[2].mxu1 %vm119_vm0, %v282_v36 }
 0x20c   :  { %v576_v41 = vpop.f32.mrb[0].mxu1 }
 0x20d   :  { %v391_v43 = vadd.f32 %v576_v41, %v295_v38  ;;  %v385_v44 = vpop.f32.mrb[1].mxu1 }
 0x20e   :  { %v386_v45 = vadd.f32 %v385_v44, %v290_v37 }
 0x20f   :  { %vm405_vm6 = vcmp.ge.f32.partialorder %v391_v43, 0.0  ;;  %v411_v46 = vmul.f32 %v409_v42, %v391_v43 }
 0x210   :  { %vm404_vm7 = vcmp.ge.f32.partialorder %v386_v45, 0.0  ;;  %v410_v48 = vmul.f32 %v409_v42, %v386_v45  ;;  %v579_v49 = vpop.f32.mrb[2].mxu1 }
 0x211   :  { %v415_v51 = vsel %vm405_vm6, %v391_v43, %v411_v46  ;;  %v401_v52 = vadd.f32 %v579_v49, %v305_v40  ;;  %v395_v53 = vpop.f32.mrb[3].mxu1 }
 0x212   :  { %v443_v54 = vmul.f32 %v430_v50, %v415_v51  ;;  %v414_v55 = vsel %vm404_vm7, %v386_v45, %v410_v48  ;;  %v396_v56 = vadd.f32 %v395_v53, %v300_v39 }
 0x213   :  { %v442_v57 = vmul.f32 %v425_v47, %v414_v55  ;;  %vm407_vm8 = vcmp.ge.f32.partialorder %v401_v52, 0.0  ;;  %v413_v58 = vmul.f32 %v409_v42, %v401_v52 }
 0x214   :  { %vm406_vm9 = vcmp.ge.f32.partialorder %v396_v56, 0.0  ;;  %v412_v59 = vmul.f32 %v409_v42, %v396_v56 }
 0x215   :  { %v446_v60 = vadd.f32 %v443_v54, %v442_v57  ;;  %v417_v62 = vsel %vm407_vm8, %v401_v52, %v413_v58 }
 0x216   :  { %v416_v63 = vsel %vm406_vm9, %v396_v56, %v412_v59  ;;  %v445_v2 = vmul.f32 %v440_v1, %v417_v62 }
 0x217   :  { %v444_v0 = vmul.f32 %v435_v61, %v416_v63 }
 0x219   :  { %v447_v3 = vadd.f32 %v446_v60, %v444_v0 }
 0x21b   :  { %v448_v4 = vadd.f32 %v447_v3, %v445_v2 }
 0x21d   :  { %v449_v5 = vrot.slane %v448_v4, 4 }
 0x21f   :  { %v450_v6 = vadd.f32 %v449_v5, %v448_v4 }
 0x221   :  { %v451_v7 = vrot.slane %v450_v6, 2 }
 0x223   :  { %v452_v8 = vadd.f32 %v451_v7, %v450_v6 }
 0x225   :  { %v453_v9 = vrot.slane %v452_v8, 1 }
 0x227   :  { %v454_v11 = vadd.f32 %v453_v9, %v452_v8 }
 0x229   :  { %v457_v12 = vadd.f32 %v456_v10, %v454_v11 }
 0x22b   :  { %458 = vst [vmem:[#allocation5] sm:$0x1] %v457_v12 }
 0x22c   :  { %664 = shalt.err (!%p661_p9)
}
 0x22d   :  { %s665_s19 = scalar_lea.hbm %s952_s8, 16 }
 0x22e   :  { %p666_p10 = scmp.ne.s32.totalorder %s952_s8, %s665_s19  ;;  %p669_p11 = scmp.lt.u32.totalorder %s665_s19, %s952_s8 }
 0x230   :  { %p671_p12 = pnand %p669_p11, %p666_p10 }
 0x232   :  { %674 = shalt.err (!%p671_p12)
}
 0x233   :  { %468 = dma.vmem_to_hbm [thread:$0]  %s466_s6, 16, %s952_s8, [#allocation3]  }
 0x234   :  { %677 = dma.done.wait [#allocation3], 16  }
 0x235   :  { %678 = vsyncadd [#allocation3], 4294967280 }
 0x236   :  { %472 = vsyncpa [#allocation3], 1 }
 0x237   :  { %473 = vsyncpa [#allocation4], 1 }

</bundles_post_ra>
